<compile_context>
chip_gen: v5e
topology: v5e:2x2
jax: 0.10.0
libtpu: 0.0.40
codegen_flags: <defaults>
</compile_context>

<pallas_src>
from functools import partial

import jax
import jax.numpy as jnp
from jax import lax
from jax.experimental import pallas as pl
from jax.experimental.pallas import tpu as pltpu


def _output_layer_kernel(x_ref, w1_ref, b1_ref, w2_ref, b2_ref, o_ref):
    """Fused FC1 -> relu -> FC2 for one (TB batches, TN vertices) tile.

    x_ref : (TB, TN, K1)      input tile, K1 = Tin*Cin on the lane axis
    w1_ref: (K1, H)           FC1 weight, pre-transposed in the wrapper
    b1_ref: (1, H)            FC1 bias (f32)
    w2_ref: (horizon, H)      FC2 weight (torch layout)
    b2_ref: (horizon, 1)      FC2 bias (f32, column vector)
    o_ref : (TB, horizon, TN) output tile, lane-dense in TN
    """
    TB, TN, K1 = x_ref.shape
    horizon = o_ref.shape[1]

    # Single big-M FC1 matmul for the whole tile (f32 MXU accumulation).
    x2d = x_ref[...].reshape(TB * TN, K1)                    # free sublane merge
    h = jnp.dot(x2d, w1_ref[...], preferred_element_type=jnp.float32)
    h = jnp.maximum(h + b1_ref[...], 0.0)                    # bias + relu in f32
    h = h.astype(w2_ref.dtype)                               # back to compute dtype

    w2 = w2_ref[...]
    b2 = jnp.broadcast_to(b2_ref[...], (horizon, TN))        # hoisted out of the b loop
    for b in range(TB):                                      # TB is small & bounded (<=32)
        h_b = h[b * TN:(b + 1) * TN, :]                      # static sublane slice
        # out[o, n] = sum_h w2[o, h] * h_b[n, h]  -> (horizon, TN), lane-dense store.
        out = lax.dot_general(w2, h_b, (((1,), (1,)), ((), ())),
                              preferred_element_type=jnp.float32) + b2
        o_ref[b] = out.astype(o_ref.dtype)


def _round_up(v, m):
    return (v + m - 1) // m * m


def _tile_vmem_bytes(TB, TN, K1, H, horizon, in_bytes):
    """Conservative per-tile VMEM estimate: double-buffered blocks + f32 intermediates."""
    lane, sub = 128, 8
    x_blk = TB * _round_up(TN, sub) * _round_up(K1, lane) * in_bytes
    o_blk = TB * _round_up(horizon, sub) * _round_up(TN, lane) * 4
    w1_blk = _round_up(K1, sub) * _round_up(H, lane) * in_bytes
    b1_blk = sub * _round_up(H, lane) * 4
    w2_blk = _round_up(horizon, sub) * _round_up(H, lane) * in_bytes
    b2_blk = _round_up(horizon, sub) * lane * 4
    blocks = 2 * (x_blk + o_blk + w1_blk + b1_blk + w2_blk + b2_blk)  # double-buffered
    h_tmp = 2 * TB * TN * _round_up(H, lane) * 4                      # FC1 f32 intermediate
    return blocks + h_tmp


def _pick_tiles(B, N_pad, K1, H, horizon, in_bytes, budget):
    """Choose (TB, TN): maximal tiles within the VMEM budget, >=2 grid points if free."""
    tn_cands = [c for c in (2048, 1024, 512, 256, 128) if N_pad % c == 0] or [N_pad]
    tb_cands = sorted({d for d in range(1, B + 1) if B % d == 0 and d <= 32},
                      reverse=True)

    best = (1, min(tn_cands))
    best_elems = 0
    for TN in tn_cands:
        for TB in tb_cands:
            if _tile_vmem_bytes(TB, TN, K1, H, horizon, in_bytes) > budget:
                continue
            if TB * TN > best_elems or (TB * TN == best_elems and TN > best[1]):
                best, best_elems = (TB, TN), TB * TN
            break                       # largest feasible TB for this TN found
    TB, TN = best

    # Give the two v7x TensorCores one block each when splitting is free
    # (negligible ~0.35us extra grid step on the single-TC v5e/v6e).
    if (B // TB) * (N_pad // TN) < 2:
        if TN % 256 == 0:
            TN //= 2
        elif TB % 2 == 0:
            TB //= 2
    return TB, TN


@partial(jax.jit, static_argnames=("compute_dtype",))
def output_layer_forward(x, w1, b1, w2, b2, compute_dtype=None):
    """
    x : (B, Tin, N, Cin)
    w1: (hidden, Tin*Cin)  (torch FC1.weight layout), b1: (hidden,)
    w2: (horizon, hidden)  (torch FC2.weight layout), b2: (horizon,)
    compute_dtype: None (keep x.dtype) or e.g. jnp.bfloat16 for MXU-native inputs
                   (f32 accumulation / bias / relu are kept regardless).
    returns: (B, horizon, N) in x.dtype
    """
    B, Tin, N, Cin = x.shape
    H, K1 = w1.shape
    horizon = w2.shape[0]
    assert K1 == Tin * Cin, "FC1 in_features must equal Tin*Cin"

    out_dtype = x.dtype
    cdt = out_dtype if compute_dtype is None else compute_dtype
    in_bytes = jnp.dtype(cdt).itemsize

    # One-time relayout (one extra HBM pass; far cheaper than 32x lane padding):
    # (B, Tin, N, Cin) -> (B, N, K1), N padded up to a multiple of 128 so the output
    # tile is lane-dense and stores are unmasked.
    x_r = jnp.transpose(x, (0, 2, 1, 3)).reshape(B, N, K1)
    N_pad = _round_up(N, 128)
    if N_pad != N:
        x_r = jnp.pad(x_r, ((0, 0), (0, N_pad - N), (0, 0)))
    x_r = x_r.astype(cdt)

    w1_k = jnp.transpose(w1, (1, 0)).astype(cdt)        # (K1, H)
    w2_c = w2.astype(cdt)                                # (horizon, H)
    b1_2d = b1.reshape(1, H).astype(jnp.float32)
    b2_2d = b2.reshape(horizon, 1).astype(jnp.float32)

    # Generation-aware VMEM budget (v7x: 64 MiB physical, v5e/v6e: 128 MiB).
    try:
        vmem_cap = int(pltpu.get_tpu_info().vmem_capacity_bytes)
    except Exception:
        vmem_cap = 64 * 1024 * 1024                      # conservative (v7x-sized) fallback
    budget = min(int(vmem_cap * 0.6), 96 * 1024 * 1024)
    vmem_limit = int(min(budget + 8 * 1024 * 1024, vmem_cap - 8 * 1024 * 1024))

    TB, TN = _pick_tiles(B, N_pad, K1, H, horizon, in_bytes, budget)
    grid = (B // TB, N_pad // TN)

    cost = pl.CostEstimate(
        flops=2 * B * N_pad * (K1 * H + H * horizon),
        transcendentals=0,
        bytes_accessed=(x_r.size * in_bytes + B * horizon * N_pad * 4
                        + w1_k.size * in_bytes + w2_c.size * in_bytes
                        + 4 * (b1.size + b2.size)),
    )

    # TODO(synk): if profiling shows exposed x DMA, add pipeline_mode=pl.Buffered(3)
    # on the x BlockSpec (re-check VMEM headroom on v7x first).
    out = pl.pallas_call(
        _output_layer_kernel,
        out_shape=jax.ShapeDtypeStruct((B, horizon, N_pad), out_dtype),
        grid_spec=pltpu.PrefetchScalarGridSpec(
            num_scalar_prefetch=0,
            grid=grid,
            in_specs=[
                pl.BlockSpec((TB, TN, K1), lambda b, n: (b, n, 0)),
                pl.BlockSpec((K1, H), lambda b, n: (0, 0)),
                pl.BlockSpec((1, H), lambda b, n: (0, 0)),
                pl.BlockSpec((horizon, H), lambda b, n: (0, 0)),
                pl.BlockSpec((horizon, 1), lambda b, n: (0, 0)),
            ],
            out_specs=pl.BlockSpec((TB, horizon, TN), lambda b, n: (b, 0, n)),
        ),
        compiler_params=pltpu.CompilerParams(
            dimension_semantics=("parallel", "parallel"),
            vmem_limit_bytes=vmem_limit,
        ),
        cost_estimate=cost,
    )(x_r, w1_k, b1_2d, w2_c, b2_2d)

    return out[:, :, :N] if N_pad != N else out


def _init_linear_params(key, in_features, out_features):
    """torch.nn.Linear-style init; weight stored in torch layout (out, in)."""
    kw, kb = jax.random.split(key)
    bound = 1.0 / float(in_features) ** 0.5
    w = jax.random.uniform(kw, (out_features, in_features), jnp.float32, -bound, bound)
    b = jax.random.uniform(kb, (out_features,), jnp.float32, -bound, bound)
    return w, b


if __name__ == "__main__":
    # Small shapes consistent with the module's forward.
    B = 2          # batch
    Tin = 8        # history
    N = 16         # num_of_vertices
    Cin = 4        # in_dim
    hidden = 32    # hidden_dim
    horizon = 12   # horizon

    key = jax.random.PRNGKey(0)
    kx, k1, k2 = jax.random.split(key, 3)

    x = jax.random.normal(kx, (B, Tin, N, Cin), jnp.float32)
    w1, b1 = _init_linear_params(k1, Tin * Cin, hidden)
    w2, b2 = _init_linear_params(k2, hidden, horizon)

    # Pure-JAX reference (same math as the PyTorch forward, torch weight layout).
    x_flat = jnp.transpose(x, (0, 2, 1, 3)).reshape(B, N, Tin * Cin)
    ref = jnp.maximum(x_flat @ w1.T + b1, 0.0) @ w2.T + b2
    ref = jnp.transpose(ref, (0, 2, 1))                       # (B, horizon, N)

    # f32 path (default): tight tolerance.
    out = jax.block_until_ready(output_layer_forward(x, w1, b1, w2, b2))
    assert out.shape == (B, horizon, N), out.shape
    assert jnp.allclose(out, ref, atol=1e-4, rtol=1e-4), "f32 mismatch vs reference"

    # bf16 compute path (f32 accumulation): looser tolerance.
    out_bf16 = jax.block_until_ready(
        output_layer_forward(x, w1, b1, w2, b2, compute_dtype=jnp.bfloat16))
    assert out_bf16.shape == (B, horizon, N), out_bf16.shape
    assert jnp.allclose(out_bf16, ref, atol=5e-2, rtol=5e-2), "bf16 mismatch vs reference"

    print("KERNEL_OK")
</pallas_src>

<mosaic_0001>
module attributes {stable_mosaic.version = 11 : i64} {
  func.func @_output_layer_kernel(%arg0: i32, %arg1: i32, %arg2: memref<1x128x32xf32, #tpu.memory_space<vmem>>, %arg3: memref<32x32xf32, #tpu.memory_space<vmem>>, %arg4: memref<1x32xf32, #tpu.memory_space<vmem>>, %arg5: memref<12x32xf32, #tpu.memory_space<vmem>>, %arg6: memref<12x1xf32, #tpu.memory_space<vmem>>, %arg7: memref<1x12x128xf32, #tpu.memory_space<vmem>>) attributes {dimension_semantics = [#tpu.dimension_semantics<parallel>, #tpu.dimension_semantics<parallel>], iteration_bounds = array<i64: 2, 1>, scalar_prefetch = 0 : i64, scratch_operands = 0 : i64, tpu.core_type = #tpu.core_type<tc>, window_params = [{transform_indices = @transform_0, window_bounds = array<i64: 1, 128, 32>}, {pipeline_mode = #tpu.pipeline_mode<synchronous>, transform_indices = @transform_1, window_bounds = array<i64: 32, 32>}, {pipeline_mode = #tpu.pipeline_mode<synchronous>, transform_indices = @transform_2, window_bounds = array<i64: 1, 32>}, {pipeline_mode = #tpu.pipeline_mode<synchronous>, transform_indices = @transform_3, window_bounds = array<i64: 12, 32>}, {pipeline_mode = #tpu.pipeline_mode<synchronous>, transform_indices = @transform_4, window_bounds = array<i64: 12, 1>}, {transform_indices = @transform_5, window_bounds = array<i64: 1, 12, 128>}]} {
    %c0 = arith.constant 0 : index
    %c0_0 = arith.constant 0 : index
    %c0_1 = arith.constant 0 : index
    %0 = vector.load %arg2[%c0, %c0_0, %c0_1] : memref<1x128x32xf32, #tpu.memory_space<vmem>>, vector<1x128x32xf32>
    %1 = vector.shape_cast %0 : vector<1x128x32xf32> to vector<128x32xf32>
    %c0_2 = arith.constant 0 : index
    %c0_3 = arith.constant 0 : index
    %2 = vector.load %arg3[%c0_2, %c0_3] : memref<32x32xf32, #tpu.memory_space<vmem>>, vector<32x32xf32>
    %cst = arith.constant dense<0.000000e+00> : vector<128x32xf32>
    %3 = tpu.matmul %1, %2, %cst {dimension_numbers = #tpu.dot_dimension_numbers<[1], [0], [0], [1], [0, 0, 1, 1], [], []>} : vector<128x32xf32>, vector<32x32xf32>, vector<128x32xf32> -> vector<128x32xf32>
    %c0_4 = arith.constant 0 : index
    %c0_5 = arith.constant 0 : index
    %4 = vector.load %arg4[%c0_4, %c0_5] : memref<1x32xf32, #tpu.memory_space<vmem>>, vector<1x32xf32>
    %5 = vector.broadcast %4 : vector<1x32xf32> to vector<128x32xf32>
    %6 = arith.addf %3, %5 : vector<128x32xf32>
    %cst_6 = arith.constant 0.000000e+00 : f32
    %7 = vector.broadcast %cst_6 : f32 to vector<128x32xf32>
    %8 = arith.maximumf %6, %7 : vector<128x32xf32>
    %c0_7 = arith.constant 0 : index
    %c0_8 = arith.constant 0 : index
    %9 = vector.load %arg5[%c0_7, %c0_8] : memref<12x32xf32, #tpu.memory_space<vmem>>, vector<12x32xf32>
    %c0_9 = arith.constant 0 : index
    %c0_10 = arith.constant 0 : index
    %10 = vector.load %arg6[%c0_9, %c0_10] : memref<12x1xf32, #tpu.memory_space<vmem>>, vector<12x1xf32>
    %11 = vector.shape_cast %10 : vector<12x1xf32> to vector<12x1xf32>
    %12 = vector.broadcast %11 : vector<12x1xf32> to vector<12x128xf32>
    %cst_11 = arith.constant dense<0.000000e+00> : vector<12x128xf32>
    %13 = tpu.matmul %9, %8, %cst_11 {dimension_numbers = #tpu.dot_dimension_numbers<[1], [1], [0], [0], [0, 0, 1, 0], [], []>} : vector<12x32xf32>, vector<128x32xf32>, vector<12x128xf32> -> vector<12x128xf32>
    %14 = arith.addf %13, %12 : vector<12x128xf32>
    %c0_12 = arith.constant 0 : index
    %c0_13 = arith.constant 0 : index
    %c0_14 = arith.constant 0 : index
    %15 = vector.load %arg7[%c0_12, %c0_13, %c0_14] : memref<1x12x128xf32, #tpu.memory_space<vmem>>, vector<1x12x128xf32>
    %16 = vector.shape_cast %15 : vector<1x12x128xf32> to vector<12x128xf32>
    %17 = vector.shape_cast %14 : vector<12x128xf32> to vector<1x12x128xf32>
    tpu.vector_store %arg7[%c0_12, %c0_13, %c0_14], %17 {strides = array<i32>} : memref<1x12x128xf32, #tpu.memory_space<vmem>>, vector<1x12x128xf32>,
    return
  }
  func.func @transform_0(%arg0: i32, %arg1: i32) -> (i32, i32, i32) {
    %c0_i32 = arith.constant 0 : i32
    %c0_i32_0 = arith.constant 0 : i32
    return %arg0, %arg1, %c0_i32 : i32, i32, i32
  }
  func.func @transform_1(%arg0: i32, %arg1: i32) -> (i32, i32) {
    %c0_i32 = arith.constant 0 : i32
    %c0_i32_0 = arith.constant 0 : i32
    %c0_i32_1 = arith.constant 0 : i32
    return %c0_i32, %c0_i32_0 : i32, i32
  }
  func.func @transform_2(%arg0: i32, %arg1: i32) -> (i32, i32) {
    %c0_i32 = arith.constant 0 : i32
    %c0_i32_0 = arith.constant 0 : i32
    %c0_i32_1 = arith.constant 0 : i32
    return %c0_i32, %c0_i32_0 : i32, i32
  }
  func.func @transform_3(%arg0: i32, %arg1: i32) -> (i32, i32) {
    %c0_i32 = arith.constant 0 : i32
    %c0_i32_0 = arith.constant 0 : i32
    %c0_i32_1 = arith.constant 0 : i32
    return %c0_i32, %c0_i32_0 : i32, i32
  }
  func.func @transform_4(%arg0: i32, %arg1: i32) -> (i32, i32) {
    %c0_i32 = arith.constant 0 : i32
    %c0_i32_0 = arith.constant 0 : i32
    %c0_i32_1 = arith.constant 0 : i32
    return %c0_i32, %c0_i32_0 : i32, i32
  }
  func.func @transform_5(%arg0: i32, %arg1: i32) -> (i32, i32, i32) {
    %c0_i32 = arith.constant 0 : i32
    %c0_i32_0 = arith.constant 0 : i32
    return %arg0, %c0_i32, %arg1 : i32, i32, i32
  }
}

</mosaic_0001>

<bundles_post_ra>
// kernel: output_layer_forward.1
= control target key start
LH: loop header
LB: loop body
LE: loop exit
PB: predicated region body
PF: predicated region fallthrough
CT: control target
= control target key end

     0   :  { %s728_s18 = smov 0   ;;  %s730_s19 = smov 0   ;;  %s844_s0 = inlined_call_operand.vmem [shape: f32[2,128,32], index: 0, kind: input, shape index: {}]   ;;  %s845_s1 = inlined_call_operand.vmem [shape: f32[32,32], index: 1, kind: input, shape index: {}]   ;;  %s846_s2 = inlined_call_operand.vmem [shape: f32[1,32], index: 2, kind: input, shape index: {}]   ;;  %s847_s3 = inlined_call_operand.vmem [shape: f32[12,32], index: 3, kind: input, shape index: {}]   ;;  %s848_s4 = inlined_call_operand.vmem [shape: f32[12,1], index: 4, kind: input, shape index: {}]   ;;  %s849_s5 = inlined_call_operand.vmem [shape: f32[2,12,128], index: 5, kind: output, shape index: {}]  }
   0x1   :  { %s732_s20 = smov 0  }
   0x2 LB: > { %s27_s21 = sadd.s32 1, %s691_s19  ;;  %p595_p0 = scmp.ge.s32.totalorder %s695_s20, 1  ;;  %s695_s20 = sphi %s732_s20, %s15_s20   ;;  %s691_s19 = sphi %s730_s19, %s851_s19   ;;  %s687_s18 = sphi %s728_s18, %s850_s18  }
   0x3   : > { %p29_p1 = scmp.ge.s32.totalorder %s27_s21, 2  ;;  %p208_p2 = scmp.lt.s32.totalorder %s695_s20, 3 }
   0x5   : > { %s853_s21 = smov (%p29_p1, %s27_s21), 0  ;;  %p209_p3 = pnand %p595_p0, %p208_p2 }
   0x6   : > { %p244_p4 = scmp.lt.s32.totalorder (!%p209_p3), %s687_s18, 1 }
   0x7   : > { %212 = sbr.rel (%p209_p3) target bundleno = 392 (0x188), region = 40 }
   0xc   : > { %v280_v0 = vld [vmem:[%s845_s1 + $0x18] sm:$0xff]  ;;  %v279_v1 = vld [vmem:[%s845_s1 + $0x10] sm:$0xff]  ;;  %v278_v2 = vld [vmem:[%s845_s1 + $0x8] sm:$0xff]  ;;  %s855_s18 = smov (!%p244_p4, %s687_s18), 1  ;;  %vm285_vm0 = vcmask 261120   ;;  %v697_v58 = vmov 0  }
   0xd   : > { %638 = vmatpush.msra.mxu2 %v280_v0  ;;  %639 = vmatpush.msra.mxu3 %v280_v0  ;;  %v277_v3 = vld [vmem:[%s845_s1] sm:$0xff]  ;;  %s636_s30 = sshll.u32 %s855_s18, 7  ;;  %v418_v62 = vld [vmem:[%s848_s4 + $0x8] sm:$0xf]  ;;  %s637_s23 = sshll.u32 %s855_s18, 4 }
   0xe   : > { %346 = vmatpush.msra.mxu0 %v280_v0  ;;  %s764_s8 = scalar_lea.vmem %s844_s0, %s636_s30  ;;  %v672_v24 = vld [vmem:[%s846_s2] ss:$0 sm:$0xff]  ;;  %671 = vset.pattern.permute.xlu0 %v697_v58  ;;  %s260_s26 = scalar_lea.vmem %s849_s5, %s637_s23 }
   0xf   : > { %640 = vmatpush.msra.mxu2 %v279_v1  ;;  %641 = vmatpush.msra.mxu3 %v279_v1  ;;  %v267_v4 = vld [vmem:[%s764_s8 + $0x30] sm:$0xff]  ;;  %v274_v5 = vld [vmem:[%s764_s8 + $0x68] sm:$0xff]  ;;  %v268_v6 = vld [vmem:[%s764_s8 + $0x38] sm:$0xff] }
  0x10   : > { %347 = vmatpush.msra.mxu0 %v279_v1  ;;  %v275_v7 = vld [vmem:[%s764_s8 + $0x70] sm:$0xff]  ;;  %v261_v8 = vld [vmem:[%s764_s8] sm:$0xff]  ;;  %v276_v10 = vld [vmem:[%s764_s8 + $0x78] sm:$0xff] }
  0x11   : > { %642 = vmatpush.msra.mxu2 %v278_v2  ;;  %643 = vmatpush.msra.mxu3 %v278_v2  ;;  %v269_v9 = vld [vmem:[%s764_s8 + $0x40] sm:$0xff]  ;;  %v262_v11 = vld [vmem:[%s764_s8 + $0x8] sm:$0xff]  ;;  %v263_v13 = vld [vmem:[%s764_s8 + $0x10] sm:$0xff] }
  0x12   : > { %348 = vmatpush.msra.mxu0 %v278_v2  ;;  %v270_v12 = vld [vmem:[%s764_s8 + $0x48] sm:$0xff]  ;;  %v271_v14 = vld [vmem:[%s764_s8 + $0x50] sm:$0xff]  ;;  %v264_v15 = vld [vmem:[%s764_s8 + $0x18] sm:$0xff] }
  0x13   : > { %644 = vmatpush.msra.mxu2 %v277_v3  ;;  %645 = vmatpush.msra.mxu3 %v277_v3  ;;  %v272_v16 = vld [vmem:[%s764_s8 + $0x58] sm:$0xff]  ;;  %v265_v17 = vld [vmem:[%s764_s8 + $0x20] sm:$0xff]  ;;  %v266_v19 = vld [vmem:[%s764_s8 + $0x28] sm:$0xff] }
  0x14   : > { %606 = vmatmul.msk.f32.vlgmr.msra.gmra.mxu2 %vm285_vm0, %v267_v4  ;;  %613 = vmatmul.msk.f32.vlgmr.msra.gmra.mxu3 %vm285_vm0, %v274_v5  ;;  %v273_v18 = vld [vmem:[%s764_s8 + $0x60] sm:$0xff] }
  0x15   : > { %349 = vmatpush.msra.mxu0 %v277_v3  ;;  %v417_v56 = vld [vmem:[%s848_s4] sm:$0xff] }
  0x16   : > { %600 = vmatmul.msk.f32.vlgmr.msra.gmra.mxu0 %vm285_vm0, %v261_v8  ;;  %421 = vperm.xlu0 %671, %v417_v56   ;;  %v415_v8 = vld [vmem:[%s847_s3] sm:$0xff] }
  0x1c   : > { %607 = vmatmul.msk.f32.gmra.mxu2 %vm285_vm0, %v268_v6  ;;  %614 = vmatmul.msk.f32.gmra.mxu3 %vm285_vm0, %v275_v7 }
  0x1e   : > { %601 = vmatmul.msk.f32.gmra.mxu0 %vm285_vm0, %v262_v11  ;;  %426 = vperm.xlu0 %671, %v418_v62  }
  0x24   : > { %608 = vmatmul.msk.f32.gmra.mxu2 %vm285_vm0, %v269_v9  ;;  %615 = vmatmul.msk.f32.gmra.mxu3 %vm285_vm0, %v276_v10  ;;  %v416_v9 = vld [vmem:[%s847_s3 + $0x8] sm:$0xf] }
  0x26   : > { %602 = vmatmul.msk.f32.gmra.mxu0 %vm285_vm0, %v263_v13 }
  0x2c   : > { %609 = vmatmul.msk.f32.gmra.mxu2 %vm285_vm0, %v270_v12 }
  0x2e   : > { %603 = vmatmul.msk.f32.gmra.mxu0 %vm285_vm0, %v264_v15 }
  0x34   : > { %610 = vmatmul.msk.f32.gmra.mxu2 %vm285_vm0, %v271_v14 }
  0x36   : > { %604 = vmatmul.msk.f32.gmra.mxu0 %vm285_vm0, %v265_v17 }
  0x3c   : > { %611 = vmatmul.msk.f32.gmra.mxu2 %vm285_vm0, %v272_v16 }
  0x3e   : > { %605 = vmatmul.msk.f32.gmra.mxu0 %vm285_vm0, %v266_v19 }
  0x44   : > { %612 = vmatmul.msk.f32.gmra.mxu2 %vm285_vm0, %v273_v18 }
  0x88   : > { %v422_v10 = vpop.permute.xlu0 %421 }
  0x90   : > { %v427_v13 = vpop.permute.xlu0 %426 }
  0x93   : > { %v351_v30 = vpop.f32.mrf.mxu0 }
  0x94   : > { %v352_v5 = vadd.f32 %v672_v24, %v351_v30 }
  0x96   : > { %v399_v7 = vmax.f32 %v352_v5, 0.0 }
  0x97   : > { %v369_v20 = vpop.f32.mrf.mxu2  ;;  %v390_v21 = vpop.f32.mrf.mxu3 }
  0x98   : > { %v391_v32 = vadd.f32 %v672_v24, %v390_v21  ;;  %v370_v54 = vadd.f32 %v672_v24, %v369_v20 }
  0x9a   : > { %v412_v34 = vmax.f32 %v391_v32, 0.0  ;;  %v405_v59 = vmax.f32 %v370_v54, 0.0 }
  0x9b   : > { %v354_v35 = vpop.f32.mrf.mxu0 }
  0x9c   : > { %v355_v3 = vadd.f32 %v672_v24, %v354_v35 }
  0x9e   : > { %v400_v6 = vmax.f32 %v355_v3, 0.0 }
  0x9f   : > { %v372_v22 = vpop.f32.mrf.mxu2  ;;  %v393_v23 = vpop.f32.mrf.mxu3 }
  0xa0   : > { %v394_v27 = vadd.f32 %v672_v24, %v393_v23  ;;  %v373_v51 = vadd.f32 %v672_v24, %v372_v22 }
  0xa2   : > { %v413_v31 = vmax.f32 %v394_v27, 0.0  ;;  %v406_v55 = vmax.f32 %v373_v51, 0.0 }
  0xa3   : > { %v357_v38 = vpop.f32.mrf.mxu0 }
  0xa4   : > { %v358_v1 = vadd.f32 %v672_v24, %v357_v38 }
  0xa6   : > { %v401_v4 = vmax.f32 %v358_v1, 0.0 }
  0xa7   : > { %v375_v25 = vpop.f32.mrf.mxu2  ;;  %v396_v26 = vpop.f32.mrf.mxu3 }
  0xa8   : > { %v397_v28 = vadd.f32 %v672_v24, %v396_v26  ;;  %v376_v49 = vadd.f32 %v672_v24, %v375_v25 }
  0xaa   : > { %v414_v29 = vmax.f32 %v397_v28, 0.0  ;;  %v407_v52 = vmax.f32 %v376_v49, 0.0 }
  0xab   : > { %v360_v41 = vpop.f32.mrf.mxu0 }
  0xac   : > { %616 = vmatpush.xpose.msk.msra.mxu1 %vm285_vm0, %v414_v29  ;;  %v361_v63 = vadd.f32 %v672_v24, %v360_v41 }
  0xae   : > { %v402_v2 = vmax.f32 %v361_v63, 0.0 }
  0xaf   : > { %v378_v33 = vpop.f32.mrf.mxu2 }
  0xb0   : > { %617 = vmatpush.xpose.msk.msra.mxu1 %vm285_vm0, %v413_v31  ;;  %v379_v46 = vadd.f32 %v672_v24, %v378_v33 }
  0xb2   : > { %v408_v50 = vmax.f32 %v379_v46, 0.0 }
  0xb3   : > { %v363_v48 = vpop.f32.mrf.mxu0 }
  0xb4   : > { %618 = vmatpush.xpose.msk.msra.mxu1 %vm285_vm0, %v412_v34  ;;  %v364_v61 = vadd.f32 %v672_v24, %v363_v48 }
  0xb6   : > { %v403_v0 = vmax.f32 %v364_v61, 0.0 }
  0xb7   : > { %v381_v36 = vpop.f32.mrf.mxu2 }
  0xb8   : > { %v382_v44 = vadd.f32 %v672_v24, %v381_v36 }
  0xba   : > { %v409_v47 = vmax.f32 %v382_v44, 0.0 }
  0xbb   : > { %v366_v53 = vpop.f32.mrf.mxu0 }
  0xbc   : > { %v367_v57 = vadd.f32 %v672_v24, %v366_v53 }
  0xbe   : > { %v404_v60 = vmax.f32 %v367_v57, 0.0 }
  0xbf   : > { %v384_v37 = vpop.f32.mrf.mxu2 }
  0xc0   : > { %v385_v42 = vadd.f32 %v672_v24, %v384_v37 }
  0xc2   : > { %v410_v45 = vmax.f32 %v385_v42, 0.0 }
  0xc7   : > { %v387_v39 = vpop.f32.mrf.mxu2 }
  0xc8   : > { %v388_v40 = vadd.f32 %v672_v24, %v387_v39 }
  0xca   : > { %v411_v43 = vmax.f32 %v388_v40, 0.0 }
  0xcc   : > { %619 = vmatpush.xpose.msk.msra.mxu1 %vm285_vm0, %v411_v43 }
  0xd0   : > { %620 = vmatpush.xpose.msk.msra.mxu1 %vm285_vm0, %v410_v45 }
  0xd4   : > { %621 = vmatpush.xpose.msk.msra.mxu1 %vm285_vm0, %v409_v47 }
  0xd8   : > { %622 = vmatpush.xpose.msk.msra.mxu1 %vm285_vm0, %v408_v50 }
  0xdc   : > { %623 = vmatpush.xpose.msk.msra.mxu1 %vm285_vm0, %v407_v52 }
  0xe0   : > { %624 = vmatpush.xpose.msk.msra.mxu1 %vm285_vm0, %v406_v55 }
  0xe4   : > { %625 = vmatpush.xpose.msk.msra.mxu1 %vm285_vm0, %v405_v59 }
  0xe8   : > { %626 = vmatpush.xpose.msk.msra.mxu1 %vm285_vm0, %v404_v60 }
  0xec   : > { %627 = vmatpush.xpose.msk.msra.mxu1 %vm285_vm0, %v403_v0 }
  0xf0   : > { %628 = vmatpush.xpose.msk.msra.mxu1 %vm285_vm0, %v402_v2 }
  0xf4   : > { %629 = vmatpush.xpose.msk.msra.mxu1 %vm285_vm0, %v401_v4 }
  0xf8   : > { %630 = vmatpush.xpose.msk.msra.mxu1 %vm285_vm0, %v400_v6 }
  0xfc   : > { %631 = vmatpush.xpose.msk.msra.mxu1 %vm285_vm0, %v399_v7 }
  0xff   : > { %632 = vmatmul.msk.f32.vlgmr.msra.gmra.mxu1 %vm285_vm0, %v415_v8 }
 0x107   : > { %633 = vmatmul.msk.f32.gmra.mxu1 %vm285_vm0, %v416_v9 }
 0x17c   : > { %v500_v11 = vpop.f32.mrf.mxu1 }
 0x17d   : > { %v501_v12 = vadd.f32 %v500_v11, %v422_v10 }
 0x17f   : > { %506 = vst [vmem:[%s260_s26] sm:$0xff] %v501_v12 }
 0x184   : > { %v503_v14 = vpop.f32.mrf.mxu1 }
 0x185   : > { %v504_v15 = vadd.f32 %v503_v14, %v427_v13 }
 0x187   : > { %507 = vst [vmem:[%s260_s26 + $0x8] sm:$0xf] %v504_v15 }
 0x188 PF: > { %s15_s20 = sadd.s32 1, %s695_s20   ;;  %s850_s18 = smov %s691_s19 }
 0x189   : > { %p12_p5 = scmp.ge.s32.totalorder %s15_s20, 4   ;;  %s851_s19 = smov %s853_s21 }
 0x18b   :  { %14 = sbr.rel (!%p12_p5) target bundleno = 2 (0x2), region = 70 }

</bundles_post_ra>
